<compile_context>
chip_gen: v5e
topology: v5e:2x2
jax: 0.10.0
libtpu: 0.0.40
codegen_flags: <defaults>
</compile_context>

<pallas_src>
import functools

import jax
import jax.numpy as jnp
from jax.experimental import pallas as pl
from jax.experimental.pallas import tpu as pltpu


def _round_up(a, m):
    return (a + m - 1) // m * m


def _row_to_col(row):
    """[1, B] -> [B, 1] via broadcast compare + lane-reduce (no [B,B] iotas)."""
    b = row.shape[1]
    r = jax.lax.broadcasted_iota(jnp.int32, (b, 1), 0)
    c = jax.lax.broadcasted_iota(jnp.int32, (1, b), 1)
    return jnp.sum(jnp.where(r == c, row, 0.0), axis=1, keepdims=True)


def _global_attention_kernel(x_ref, batch_ref, w1_ref, b1_ref, w2_ref, b2_ref,
                             out_ref, m_sc):
    f32 = jnp.float32
    NEG = f32(-1e30)
    step = pl.program_id(0)
    bp, fop = out_ref.shape            # [b_pad, fo_pad]

    @pl.when(step == 0)
    def _init():
        m_sc[...] = jnp.full_like(m_sc, NEG)
        out_ref[...] = jnp.zeros_like(out_ref)   # output block doubles as the accumulator

    # ---- fused MLP: one [F, h_tot] matmul + one block-diagonal [h_tot, fo_pad]
    # matmul. y columns: [0:Fo) feat, fop-2 constant 1.0, fop-1 gate.
    x = x_ref[...]
    h = jnp.dot(x, w1_ref[...], preferred_element_type=f32) + b1_ref[...]
    h = jnp.maximum(h, 0.0)
    y = jnp.dot(h.astype(w2_ref.dtype), w2_ref[...],
                preferred_element_type=f32) + b2_ref[...]              # [bn, fop] f32

    # gate = last fused column (broadcast [1,fop] lane iota, no [bn,fop] iota)
    lane_fop = jax.lax.broadcasted_iota(jnp.int32, (1, fop), 1)
    gate = jnp.sum(jnp.where(lane_fop == fop - 1, y, 0.0),
                   axis=1, keepdims=True)                              # [bn, 1]

    # segment membership of this node block: [bn,1] ids vs [1,bp] lane iota
    seg = jax.lax.broadcasted_iota(jnp.int32, (1, bp), 1)
    member = batch_ref[...] == seg                                     # bool [bn, bp]

    # ---- online (flash-style) per-graph softmax max update ----
    m_old = m_sc[...]                                                  # [1, bp]
    bmax = jnp.max(jnp.where(member, gate, NEG), axis=0, keepdims=True)
    m_new = jnp.maximum(m_old, bmax)
    alpha = jnp.exp(m_old - m_new)                                     # [1, bp]
    m_sc[...] = m_new

    # per-node gather of its graph's running max (select + lane reduce)
    node_m = jnp.sum(jnp.where(member, m_new, 0.0), axis=1, keepdims=True)  # [bn,1]
    e = jnp.exp(gate - node_m)                                         # [bn, 1]

    # ---- scatter-add: contract node axis of both operands on the MXU.
    # The constant-1 fused column makes contrib[:, fop-2] the per-graph sum of
    # e, so the softmax denominator rides along for free.
    weighted = e * y                                                   # [bn, fop] f32
    mm_dtype = w2_ref.dtype                                            # bf16 when use_bf16
    contrib = jax.lax.dot_general(member.astype(mm_dtype),
                                  weighted.astype(mm_dtype),
                                  (((0,), (0,)), ((), ())),
                                  preferred_element_type=f32)          # [bp, fop]
    out_ref[...] = _row_to_col(alpha) * out_ref[...] + contrib

    @pl.when(step == pl.num_programs(0) - 1)
    def _finalize():
        acc = out_ref[...]
        denom = jnp.sum(jnp.where(lane_fop == fop - 2, acc, 0.0),
                        axis=1, keepdims=True) + 1e-16                 # [bp, 1]
        inv = pl.reciprocal(denom, approx=True)                        # EUP slot
        inv = inv * (2.0 - denom * inv)                                # 1 Newton step
        out_ref[...] = acc * inv


@functools.partial(jax.jit, static_argnames=("num_graphs", "block_n", "use_bf16"))
def global_attention(x, batch, params, num_graphs, *, block_n=1024, use_bf16=False):
    """x: [N, F] float32, batch: [N] int32 graph ids in [0, num_graphs)."""
    N, F = x.shape
    H = params["w1"].shape[1]
    Hg = params["w1g"].shape[1]
    Fo = params["w2"].shape[1]

    # ---- padded / fused sizes (lane-dense working widths) ----
    mult = 16 if use_bf16 else 8                 # sublane tiling of the x block
    block_n = max(mult, min(block_n, _round_up(N, mult)))
    block_n = _round_up(block_n, mult)           # keep (block_n, F) spec tileable
    n_pad = _round_up(N, block_n)
    h_off = _round_up(H, 8)                      # start of the gate-head columns
    h_tot = _round_up(h_off + Hg, 128)           # fused hidden width, lane dense
    fo_pad = _round_up(Fo + 2, 128)              # feat + constant-1 col + gate col
    ones_col = fo_pad - 2
    gate_col = fo_pad - 1
    b_pad = _round_up(num_graphs + 1, 8)         # +1 slot absorbs padded nodes

    f32 = jnp.float32
    # fused first layer: [F, h_tot] = [ w1 | 0 | w1g | 0 ]
    w1f = jnp.zeros((F, h_tot), f32)
    w1f = w1f.at[:, :H].set(params["w1"].astype(f32))
    w1f = w1f.at[:, h_off:h_off + Hg].set(params["w1g"].astype(f32))
    b1f = jnp.zeros((1, h_tot), f32)
    b1f = b1f.at[:, :H].set(params["b1"].reshape(1, H).astype(f32))
    b1f = b1f.at[:, h_off:h_off + Hg].set(params["b1g"].reshape(1, Hg).astype(f32))

    # fused (block-diagonal) second layer:
    #   feat -> cols [0:Fo), gate -> col gate_col, constant 1 -> col ones_col
    w2f = jnp.zeros((h_tot, fo_pad), f32)
    w2f = w2f.at[:H, :Fo].set(params["w2"].astype(f32))
    w2f = w2f.at[h_off:h_off + Hg, gate_col:gate_col + 1].set(params["w2g"].astype(f32))
    b2f = jnp.zeros((1, fo_pad), f32)
    b2f = b2f.at[:, :Fo].set(params["b2"].reshape(1, Fo).astype(f32))
    b2f = b2f.at[:, gate_col].set(params["b2g"].reshape(()).astype(f32))
    b2f = b2f.at[:, ones_col].set(1.0)           # softmax-denominator column

    # node padding: padded rows go to segment `num_graphs` (sliced away below)
    x_p = jnp.zeros((n_pad, F), f32).at[:N].set(x.astype(f32))
    batch_p = jnp.full((n_pad, 1), num_graphs, jnp.int32)
    batch_p = batch_p.at[:N, 0].set(batch.astype(jnp.int32))

    if use_bf16:  # MXU operands only; biases / softmax math / accumulation stay f32
        x_p = x_p.astype(jnp.bfloat16)
        w1f = w1f.astype(jnp.bfloat16)
        w2f = w2f.astype(jnp.bfloat16)

    grid = (n_pad // block_n,)
    out = pl.pallas_call(
        _global_attention_kernel,
        out_shape=jax.ShapeDtypeStruct((b_pad, fo_pad), jnp.float32),
        grid=grid,
        in_specs=[
            pl.BlockSpec((block_n, F), lambda i: (i, 0)),        # x (tiled over N)
            pl.BlockSpec((block_n, 1), lambda i: (i, 0)),        # batch ids
            # constant-index weights/biases: fetched once, single-buffered
            pl.BlockSpec((F, h_tot), lambda i: (0, 0), pipeline_mode=pl.Buffered(1)),
            pl.BlockSpec((1, h_tot), lambda i: (0, 0), pipeline_mode=pl.Buffered(1)),
            pl.BlockSpec((h_tot, fo_pad), lambda i: (0, 0), pipeline_mode=pl.Buffered(1)),
            pl.BlockSpec((1, fo_pad), lambda i: (0, 0), pipeline_mode=pl.Buffered(1)),
        ],
        out_specs=pl.BlockSpec((b_pad, fo_pad), lambda i: (0, 0)),  # VMEM-resident acc
        scratch_shapes=[
            pltpu.VMEM((1, b_pad), jnp.float32),   # running per-graph max
        ],
        compiler_params=pltpu.CompilerParams(
            dimension_semantics=("arbitrary",),     # output accumulates over blocks
            vmem_limit_bytes=48 * 1024 * 1024,      # <= v7x 64 MiB; > v5e/v6e defaults
        ),
    )(x_p, batch_p, w1f, b1f, w2f, b2f)

    return out[:num_graphs, :Fo]


def reference(x, batch, params, num_graphs):
    """Pure-JAX reference for validation."""
    hg = jnp.maximum(x @ params["w1g"] + params["b1g"], 0.0)
    gate = hg @ params["w2g"] + params["b2g"]                       # [N,1]
    h = jnp.maximum(x @ params["w1"] + params["b1"], 0.0)
    feat = h @ params["w2"] + params["b2"]                          # [N,Fo]
    seg_max = jax.ops.segment_max(gate, batch, num_segments=num_graphs)
    e = jnp.exp(gate - seg_max[batch])
    seg_sum = jax.ops.segment_sum(e, batch, num_segments=num_graphs)
    attn = e / (seg_sum[batch] + 1e-16)
    return jax.ops.segment_sum(attn * feat, batch, num_segments=num_graphs)


if __name__ == "__main__":
    # Small shapes: N=64 nodes, F=16 input features, H=32 hidden,
    # Fo=32 output features, B=4 graphs (uneven node counts).
    N, F, H, Fo, B = 64, 16, 32, 32, 4

    key = jax.random.PRNGKey(0)
    ks = jax.random.split(key, 9)
    scale = 0.1
    params = {
        # gate_nn: Linear(F,H) -> ReLU -> Linear(H,1)
        "w1g": scale * jax.random.normal(ks[0], (F, H), jnp.float32),
        "b1g": scale * jax.random.normal(ks[1], (1, H), jnp.float32),
        "w2g": scale * jax.random.normal(ks[2], (H, 1), jnp.float32),
        "b2g": scale * jax.random.normal(ks[3], (1, 1), jnp.float32),
        # nn: Linear(F,H) -> ReLU -> Linear(H,Fo)
        "w1": scale * jax.random.normal(ks[4], (F, H), jnp.float32),
        "b1": scale * jax.random.normal(ks[5], (1, H), jnp.float32),
        "w2": scale * jax.random.normal(ks[6], (H, Fo), jnp.float32),
        "b2": scale * jax.random.normal(ks[7], (1, Fo), jnp.float32),
    }

    x = jax.random.normal(ks[8], (N, F), jnp.float32)
    # graph sizes 10, 22, 14, 18 (sums to 64)
    batch = jnp.repeat(jnp.arange(B, dtype=jnp.int32),
                       jnp.array([10, 22, 14, 18], dtype=jnp.int32),
                       total_repeat_length=N)

    ref = reference(x, batch, params, B)

    # f32 path; block_n=32 -> 2 grid steps, exercising the online segment softmax
    out = jax.block_until_ready(global_attention(x, batch, params, B, block_n=32))
    assert out.shape == (B, Fo)
    assert jnp.allclose(out, ref, atol=2e-4, rtol=2e-4), \
        f"max abs diff {jnp.max(jnp.abs(out - ref))}"

    # bf16 MXU-operand path (f32 accumulation / softmax math, bf16 scatter matmul)
    out_bf16 = jax.block_until_ready(
        global_attention(x, batch, params, B, block_n=32, use_bf16=True))
    assert jnp.allclose(out_bf16, ref, atol=5e-2, rtol=5e-2), \
        f"bf16 max abs diff {jnp.max(jnp.abs(out_bf16 - ref))}"

    # default (single grid step) path
    out_1 = jax.block_until_ready(global_attention(x, batch, params, B))
    assert jnp.allclose(out_1, ref, atol=2e-4, rtol=2e-4)

    print("KERNEL_OK")
</pallas_src>

<mosaic_0001>
module attributes {stable_mosaic.version = 11 : i64} {
  func.func @_global_attention_kernel(%arg0: i32, %arg1: memref<32x16xf32, #tpu.memory_space<vmem>>, %arg2: memref<32x1xi32, #tpu.memory_space<vmem>>, %arg3: memref<16x128xf32, #tpu.memory_space<vmem>>, %arg4: memref<1x128xf32, #tpu.memory_space<vmem>>, %arg5: memref<128x128xf32, #tpu.memory_space<vmem>>, %arg6: memref<1x128xf32, #tpu.memory_space<vmem>>, %arg7: memref<8x128xf32, #tpu.memory_space<vmem>>, %arg8: memref<1x8xf32, #tpu.memory_space<vmem>>) attributes {dimension_semantics = [#tpu.dimension_semantics<arbitrary>], iteration_bounds = array<i64: 2>, scalar_prefetch = 0 : i64, scratch_operands = 1 : i64, tpu.core_type = #tpu.core_type<tc>, window_params = [{transform_indices = @transform_0, window_bounds = array<i64: 32, 16>}, {transform_indices = @transform_1, window_bounds = array<i64: 32, 1>}, {pipeline_mode = #tpu.pipeline_mode<synchronous>, transform_indices = @transform_2, window_bounds = array<i64: 16, 128>}, {pipeline_mode = #tpu.pipeline_mode<synchronous>, transform_indices = @transform_3, window_bounds = array<i64: 1, 128>}, {pipeline_mode = #tpu.pipeline_mode<synchronous>, transform_indices = @transform_4, window_bounds = array<i64: 128, 128>}, {pipeline_mode = #tpu.pipeline_mode<synchronous>, transform_indices = @transform_5, window_bounds = array<i64: 1, 128>}, {pipeline_mode = #tpu.pipeline_mode<synchronous>, transform_indices = @transform_6, window_bounds = array<i64: 8, 128>}]} {
    %c0_i32 = arith.constant 0 : i32
    %0 = arith.cmpi eq, %arg0, %c0_i32 : i32
    %1 = arith.extui %0 : i1 to i32
    %cst = arith.constant -1.000000e+30 : f32
    %c0_i32_0 = arith.constant 0 : i32
    %2 = arith.cmpi ne, %1, %c0_i32_0 : i32
    scf.if %2 {
      %73 = vector.broadcast %cst : f32 to vector<1x8xf32>
      %c0_33 = arith.constant 0 : index
      %c0_34 = arith.constant 0 : index
      %74 = vector.load %arg8[%c0_33, %c0_34] : memref<1x8xf32, #tpu.memory_space<vmem>>, vector<1x8xf32>
      tpu.vector_store %arg8[%c0_33, %c0_34], %73 {strides = array<i32>} : memref<1x8xf32, #tpu.memory_space<vmem>>, vector<1x8xf32>,
      %cst_35 = arith.constant 0.000000e+00 : f32
      %75 = vector.broadcast %cst_35 : f32 to vector<8x128xf32>
      %c0_36 = arith.constant 0 : index
      %c0_37 = arith.constant 0 : index
      %76 = vector.load %arg7[%c0_36, %c0_37] : memref<8x128xf32, #tpu.memory_space<vmem>>, vector<8x128xf32>
      tpu.vector_store %arg7[%c0_36, %c0_37], %75 {strides = array<i32>} : memref<8x128xf32, #tpu.memory_space<vmem>>, vector<8x128xf32>,
    } else {
    }
    %c0 = arith.constant 0 : index
    %c0_1 = arith.constant 0 : index
    %3 = vector.load %arg1[%c0, %c0_1] : memref<32x16xf32, #tpu.memory_space<vmem>>, vector<32x16xf32>
    %c0_2 = arith.constant 0 : index
    %c0_3 = arith.constant 0 : index
    %4 = vector.load %arg3[%c0_2, %c0_3] : memref<16x128xf32, #tpu.memory_space<vmem>>, vector<16x128xf32>
    %cst_4 = arith.constant dense<0.000000e+00> : vector<32x128xf32>
    %5 = tpu.matmul %3, %4, %cst_4 {dimension_numbers = #tpu.dot_dimension_numbers<[1], [0], [0], [1], [0, 0, 1, 1], [], []>} : vector<32x16xf32>, vector<16x128xf32>, vector<32x128xf32> -> vector<32x128xf32>
    %c0_5 = arith.constant 0 : index
    %c0_6 = arith.constant 0 : index
    %6 = vector.load %arg4[%c0_5, %c0_6] : memref<1x128xf32, #tpu.memory_space<vmem>>, vector<1x128xf32>
    %7 = vector.broadcast %6 : vector<1x128xf32> to vector<32x128xf32>
    %8 = arith.addf %5, %7 : vector<32x128xf32>
    %cst_7 = arith.constant 0.000000e+00 : f32
    %9 = vector.broadcast %cst_7 : f32 to vector<32x128xf32>
    %10 = arith.maximumf %8, %9 : vector<32x128xf32>
    %c0_8 = arith.constant 0 : index
    %c0_9 = arith.constant 0 : index
    %11 = vector.load %arg5[%c0_8, %c0_9] : memref<128x128xf32, #tpu.memory_space<vmem>>, vector<128x128xf32>
    %cst_10 = arith.constant dense<0.000000e+00> : vector<32x128xf32>
    %12 = tpu.matmul %10, %11, %cst_10 {dimension_numbers = #tpu.dot_dimension_numbers<[1], [0], [0], [1], [0, 0, 1, 1], [], []>} : vector<32x128xf32>, vector<128x128xf32>, vector<32x128xf32> -> vector<32x128xf32>
    %c0_11 = arith.constant 0 : index
    %c0_12 = arith.constant 0 : index
    %13 = vector.load %arg6[%c0_11, %c0_12] : memref<1x128xf32, #tpu.memory_space<vmem>>, vector<1x128xf32>
    %14 = vector.broadcast %13 : vector<1x128xf32> to vector<32x128xf32>
    %15 = arith.addf %12, %14 : vector<32x128xf32>
    %16 = tpu.iota {dimensions = array<i32: 1>} : vector<1x128xi32>
    %c127_i32 = arith.constant 127 : i32
    %17 = vector.broadcast %c127_i32 : i32 to vector<1x128xi32>
    %18 = arith.cmpi eq, %16, %17 : vector<1x128xi32>
    %cst_13 = arith.constant 0.000000e+00 : f32
    %19 = vector.shape_cast %18 : vector<1x128xi1> to vector<1x128xi1>
    %20 = vector.broadcast %19 : vector<1x128xi1> to vector<32x128xi1>
    %21 = vector.broadcast %cst_13 : f32 to vector<32x128xf32>
    %22 = arith.select %20, %15, %21 : vector<32x128xi1>, vector<32x128xf32>
    %cst_14 = arith.constant dense<0.000000e+00> : vector<32xf32>
    %23 = vector.multi_reduction <add>, %22, %cst_14 [1] : vector<32x128xf32> to vector<32xf32>
    %24 = vector.shape_cast %23 : vector<32xf32> to vector<32x1xf32>
    %25 = tpu.iota {dimensions = array<i32: 1>} : vector<1x8xi32>
    %c0_15 = arith.constant 0 : index
    %c0_16 = arith.constant 0 : index
    %26 = vector.load %arg2[%c0_15, %c0_16] : memref<32x1xi32, #tpu.memory_space<vmem>>, vector<32x1xi32>
    %27 = vector.broadcast %26 : vector<32x1xi32> to vector<32x8xi32>
    %28 = vector.broadcast %25 : vector<1x8xi32> to vector<32x8xi32>
    %29 = arith.cmpi eq, %27, %28 : vector<32x8xi32>
    %c0_17 = arith.constant 0 : index
    %c0_18 = arith.constant 0 : index
    %30 = vector.load %arg8[%c0_17, %c0_18] : memref<1x8xf32, #tpu.memory_space<vmem>>, vector<1x8xf32>
    %cst_19 = arith.constant -1.000000e+30 : f32
    %31 = vector.shape_cast %24 : vector<32x1xf32> to vector<32x1xf32>
    %32 = vector.broadcast %31 : vector<32x1xf32> to vector<32x8xf32>
    %33 = vector.broadcast %cst_19 : f32 to vector<32x8xf32>
    %34 = arith.select %29, %32, %33 : vector<32x8xi1>, vector<32x8xf32>
    %cst_20 = arith.constant dense<0xFF800000> : vector<8xf32>
    %35 = vector.multi_reduction <maximumf>, %34, %cst_20 [0] : vector<32x8xf32> to vector<8xf32>
    %36 = vector.shape_cast %35 : vector<8xf32> to vector<1x8xf32>
    %37 = arith.maximumf %30, %36 : vector<1x8xf32>
    %38 = arith.subf %30, %37 : vector<1x8xf32>
    %39 = math.exp %38 : vector<1x8xf32>
    %c0_21 = arith.constant 0 : index
    %c0_22 = arith.constant 0 : index
    %40 = vector.load %arg8[%c0_21, %c0_22] : memref<1x8xf32, #tpu.memory_space<vmem>>, vector<1x8xf32>
    tpu.vector_store %arg8[%c0_21, %c0_22], %37 {strides = array<i32>} : memref<1x8xf32, #tpu.memory_space<vmem>>, vector<1x8xf32>,
    %cst_23 = arith.constant 0.000000e+00 : f32
    %41 = vector.shape_cast %37 : vector<1x8xf32> to vector<1x8xf32>
    %42 = vector.broadcast %41 : vector<1x8xf32> to vector<32x8xf32>
    %43 = vector.broadcast %cst_23 : f32 to vector<32x8xf32>
    %44 = arith.select %29, %42, %43 : vector<32x8xi1>, vector<32x8xf32>
    %cst_24 = arith.constant dense<0.000000e+00> : vector<32xf32>
    %45 = vector.multi_reduction <add>, %44, %cst_24 [1] : vector<32x8xf32> to vector<32xf32>
    %46 = vector.shape_cast %45 : vector<32xf32> to vector<32x1xf32>
    %47 = arith.subf %24, %46 : vector<32x1xf32>
    %48 = math.exp %47 : vector<32x1xf32>
    %49 = vector.broadcast %48 : vector<32x1xf32> to vector<32x128xf32>
    %50 = arith.mulf %49, %15 : vector<32x128xf32>
    %51 = arith.extui %29 : vector<32x8xi1> to vector<32x8xi32>
    %52 = arith.sitofp %51 : vector<32x8xi32> to vector<32x8xf32>
    %cst_25 = arith.constant dense<0.000000e+00> : vector<8x128xf32>
    %53 = tpu.matmul %52, %50, %cst_25 {dimension_numbers = #tpu.dot_dimension_numbers<[0], [0], [1], [1], [0, 1, 1, 1], [], []>} : vector<32x8xf32>, vector<32x128xf32>, vector<8x128xf32> -> vector<8x128xf32>
    %54 = tpu.iota {dimensions = array<i32: 0>} : vector<8x1xi32>
    %55 = tpu.iota {dimensions = array<i32: 1>} : vector<1x8xi32>
    %56 = vector.broadcast %54 : vector<8x1xi32> to vector<8x8xi32>
    %57 = vector.broadcast %55 : vector<1x8xi32> to vector<8x8xi32>
    %58 = arith.cmpi eq, %56, %57 : vector<8x8xi32>
    %cst_26 = arith.constant 0.000000e+00 : f32
    %59 = vector.shape_cast %39 : vector<1x8xf32> to vector<1x8xf32>
    %60 = vector.broadcast %59 : vector<1x8xf32> to vector<8x8xf32>
    %61 = vector.broadcast %cst_26 : f32 to vector<8x8xf32>
    %62 = arith.select %58, %60, %61 : vector<8x8xi1>, vector<8x8xf32>
    %cst_27 = arith.constant dense<0.000000e+00> : vector<8xf32>
    %63 = vector.multi_reduction <add>, %62, %cst_27 [1] : vector<8x8xf32> to vector<8xf32>
    %64 = vector.shape_cast %63 : vector<8xf32> to vector<8x1xf32>
    %c0_28 = arith.constant 0 : index
    %c0_29 = arith.constant 0 : index
    %65 = vector.load %arg7[%c0_28, %c0_29] : memref<8x128xf32, #tpu.memory_space<vmem>>, vector<8x128xf32>
    %66 = vector.broadcast %64 : vector<8x1xf32> to vector<8x128xf32>
    %67 = arith.mulf %66, %65 : vector<8x128xf32>
    %68 = arith.addf %67, %53 : vector<8x128xf32>
    %c0_30 = arith.constant 0 : index
    %c0_31 = arith.constant 0 : index
    %69 = vector.load %arg7[%c0_30, %c0_31] : memref<8x128xf32, #tpu.memory_space<vmem>>, vector<8x128xf32>
    tpu.vector_store %arg7[%c0_30, %c0_31], %68 {strides = array<i32>} : memref<8x128xf32, #tpu.memory_space<vmem>>, vector<8x128xf32>,
    %c1_i32 = arith.constant 1 : i32
    %70 = arith.cmpi eq, %arg0, %c1_i32 : i32
    %71 = arith.extui %70 : i1 to i32
    %c0_i32_32 = arith.constant 0 : i32
    %72 = arith.cmpi ne, %71, %c0_i32_32 : i32
    scf.if %72 {
      %c0_33 = arith.constant 0 : index
      %c0_34 = arith.constant 0 : index
      %73 = vector.load %arg7[%c0_33, %c0_34] : memref<8x128xf32, #tpu.memory_space<vmem>>, vector<8x128xf32>
      %c126_i32 = arith.constant 126 : i32
      %74 = vector.broadcast %c126_i32 : i32 to vector<1x128xi32>
      %75 = arith.cmpi eq, %16, %74 : vector<1x128xi32>
      %cst_35 = arith.constant 0.000000e+00 : f32
      %76 = vector.shape_cast %75 : vector<1x128xi1> to vector<1x128xi1>
      %77 = vector.broadcast %76 : vector<1x128xi1> to vector<8x128xi1>
      %78 = vector.broadcast %cst_35 : f32 to vector<8x128xf32>
      %79 = arith.select %77, %73, %78 : vector<8x128xi1>, vector<8x128xf32>
      %cst_36 = arith.constant dense<0.000000e+00> : vector<8xf32>
      %80 = vector.multi_reduction <add>, %79, %cst_36 [1] : vector<8x128xf32> to vector<8xf32>
      %81 = vector.shape_cast %80 : vector<8xf32> to vector<8x1xf32>
      %cst_37 = arith.constant 1.000000e-16 : f32
      %82 = vector.broadcast %cst_37 : f32 to vector<8x1xf32>
      %83 = arith.addf %81, %82 : vector<8x1xf32>
      %84 = tpu.reciprocal %83 {approx = true} : vector<8x1xf32> -> vector<8x1xf32>
      %85 = arith.mulf %83, %84 : vector<8x1xf32>
      %cst_38 = arith.constant 2.000000e+00 : f32
      %86 = vector.broadcast %cst_38 : f32 to vector<8x1xf32>
      %87 = arith.subf %86, %85 : vector<8x1xf32>
      %88 = arith.mulf %84, %87 : vector<8x1xf32>
      %89 = vector.broadcast %88 : vector<8x1xf32> to vector<8x128xf32>
      %90 = arith.mulf %73, %89 : vector<8x128xf32>
      %c0_39 = arith.constant 0 : index
      %c0_40 = arith.constant 0 : index
      %91 = vector.load %arg7[%c0_39, %c0_40] : memref<8x128xf32, #tpu.memory_space<vmem>>, vector<8x128xf32>
      tpu.vector_store %arg7[%c0_39, %c0_40], %90 {strides = array<i32>} : memref<8x128xf32, #tpu.memory_space<vmem>>, vector<8x128xf32>,
    } else {
    }
    return
  }
  func.func @transform_0(%arg0: i32) -> (i32, i32) {
    %c0_i32 = arith.constant 0 : i32
    %c0_i32_0 = arith.constant 0 : i32
    return %arg0, %c0_i32 : i32, i32
  }
  func.func @transform_1(%arg0: i32) -> (i32, i32) {
    %c0_i32 = arith.constant 0 : i32
    %c0_i32_0 = arith.constant 0 : i32
    return %arg0, %c0_i32 : i32, i32
  }
  func.func @transform_2(%arg0: i32) -> (i32, i32) {
    %c0_i32 = arith.constant 0 : i32
    %c0_i32_0 = arith.constant 0 : i32
    %c0_i32_1 = arith.constant 0 : i32
    return %c0_i32, %c0_i32_0 : i32, i32
  }
  func.func @transform_3(%arg0: i32) -> (i32, i32) {
    %c0_i32 = arith.constant 0 : i32
    %c0_i32_0 = arith.constant 0 : i32
    %c0_i32_1 = arith.constant 0 : i32
    return %c0_i32, %c0_i32_0 : i32, i32
  }
  func.func @transform_4(%arg0: i32) -> (i32, i32) {
    %c0_i32 = arith.constant 0 : i32
    %c0_i32_0 = arith.constant 0 : i32
    %c0_i32_1 = arith.constant 0 : i32
    return %c0_i32, %c0_i32_0 : i32, i32
  }
  func.func @transform_5(%arg0: i32) -> (i32, i32) {
    %c0_i32 = arith.constant 0 : i32
    %c0_i32_0 = arith.constant 0 : i32
    %c0_i32_1 = arith.constant 0 : i32
    return %c0_i32, %c0_i32_0 : i32, i32
  }
  func.func @transform_6(%arg0: i32) -> (i32, i32) {
    %c0_i32 = arith.constant 0 : i32
    %c0_i32_0 = arith.constant 0 : i32
    %c0_i32_1 = arith.constant 0 : i32
    return %c0_i32, %c0_i32_0 : i32, i32
  }
}

</mosaic_0001>

<bundles_post_ra>
// kernel: global_attention.1
= control target key start
LH: loop header
LB: loop body
LE: loop exit
PB: predicated region body
PF: predicated region fallthrough
CT: control target
= control target key end

     0   :  { %s735_s21 = smov 0   ;;  %s932_s0 = inlined_call_operand.vmem [shape: f32[64,16], index: 0, kind: input, shape index: {}]   ;;  %s933_s1 = inlined_call_operand.vmem [shape: s32[64,1], index: 1, kind: input, shape index: {}]   ;;  %s934_s2 = inlined_call_operand.vmem [shape: f32[16,128], index: 2, kind: input, shape index: {}]   ;;  %s935_s3 = inlined_call_operand.vmem [shape: f32[1,128], index: 3, kind: input, shape index: {}]   ;;  %s936_s4 = inlined_call_operand.vmem [shape: f32[128,128], index: 4, kind: input, shape index: {}]   ;;  %s937_s5 = inlined_call_operand.vmem [shape: f32[1,128], index: 5, kind: input, shape index: {}]   ;;  %s938_s6 = inlined_call_operand.vmem [shape: f32[8,128], index: 6, kind: output, shape index: {}]  }
   0x1 LB: > { %s741_s22 = sadd.s32 4294967295, %s694_s21   ;;  %p609_p0 = scmp.ge.s32.totalorder %s694_s21, 1  ;;  %s694_s21 = sphi %s735_s21, %s16_s21  }
   0x2   : > { %p219_p1 = scmp.lt.s32.totalorder %s694_s21, 3 }
   0x4   : > { %p220_p2 = pnand %p609_p0, %p219_p1 }
   0x5   : > { %s610_s23 = sshll.u32 (!%p220_p2), %s741_s22, 2  ;;  %p614_p4 = scmp.ne.s32.totalorder (!%p220_p2), %s741_s22, 0 }
   0x6   : > { %223 = sbr.rel (%p220_p2) target bundleno = 957 (0x3bd), region = 44  ;;  %p250_p3 = scmp.lt.s32.totalorder (!%p220_p2), %s610_s23, 7 }
   0xb   : > { %s940_s23 = smov (!%p250_p3, %s610_s23), 7  ;;  %264 = sbr.rel (%p614_p4) target bundleno = 19 (0x13), region = 48 }
   0xc   : > { %s611_s24 = sshll.u32 %s940_s23, 3 }
   0xd   : > { %s749_s27 = scalar_lea.vmem %s932_s0, %s611_s24  ;;  %s754_s30 = scalar_lea.vmem %s933_s1, %s611_s24 }
  0x10   : > { %vm265_vm0 = vcmask 57344   ;;  %v696_v0 = vmov -1e+30   ;;  %v697_v1 = vmov 0.0  }
  0x11   : > { %266 = vst.msk [vmem:[#allocation2] sm:$0x1] %vm265_vm0, %v696_v0 }
  0x12   : > { %267 = vst [vmem:[%s938_s6] sm:$0xff] %v697_v1 }
  0x13 PF: > { %v273_v2 = vld [vmem:[%s934_s2 + $0x8] sm:$0xff]  ;;  %v272_v3 = vld [vmem:[%s934_s2] sm:$0xff]  ;;  %vm278_vm1 = vcmask 130048   ;;  %v339_v5 = vld [vmem:[%s936_s4 + $0x78] sm:$0xff]  ;;  %v373_v37 = vlaneseq  ;;  %v698_v39 = vmov 0   ;;  %vm415_vm6 = vcmask 64512  }
  0x14   : > { %305 = vmatpush.msra.mxu0 %v273_v2  ;;  %v268_v4 = vld [vmem:[%s749_s27] sm:$0xff]  ;;  %627 = vmatpush.msra.mxu1 %v339_v5  ;;  %v338_v6 = vld [vmem:[%s936_s4 + $0x70] sm:$0xff]  ;;  %v337_v7 = vld [vmem:[%s936_s4 + $0x68] sm:$0xff]  ;;  %vm433_vm8 = vcmask 57344   ;;  %vm510_vm10 = vcmask 261120   ;;  %p624_p5 = scmp.ne.s32.totalorder %s741_s22, 1 }
  0x15   : > { %628 = vmatpush.msra.mxu3 %v339_v5  ;;  %v336_v8 = vld [vmem:[%s936_s4 + $0x60] sm:$0xff]  ;;  %v269_v9 = vld [vmem:[%s749_s27 + $0x8] sm:$0xff]  ;;  %v335_v10 = vld [vmem:[%s936_s4 + $0x58] sm:$0xff]  ;;  %671 = vset.pattern.permute.xlu2 %v698_v39  ;;  %v827_v40 = vand.u32 127, %v373_v37 }
  0x16   : > { %306 = vmatpush.msra.mxu0 %v272_v3  ;;  %629 = vmatpush.msra.mxu1 %v338_v6  ;;  %v334_v11 = vld [vmem:[%s936_s4 + $0x50] sm:$0xff]  ;;  %v333_v12 = vld [vmem:[%s936_s4 + $0x48] sm:$0xff]  ;;  %v332_v13 = vld [vmem:[%s936_s4 + $0x40] sm:$0xff] }
  0x17   : > { %615 = vmatmul.msk.f32.vlgmr.msra.gmra.mxu0 %vm278_vm1, %v268_v4  ;;  %630 = vmatpush.msra.mxu3 %v338_v6  ;;  %v270_v14 = vld [vmem:[%s749_s27 + $0x10] sm:$0xff]  ;;  %v331_v15 = vld [vmem:[%s936_s4 + $0x38] sm:$0xff]  ;;  %v329_v17 = vld [vmem:[%s936_s4 + $0x28] sm:$0xff]  ;;  %vm375_vm2 = vcmp.eq.s32.totalorder %v827_v40, 127 }
  0x18   : > { %344 = vmatpush.msrb.mxu0 %v339_v5  ;;  %631 = vmatpush.msra.mxu1 %v337_v7  ;;  %v330_v16 = vld [vmem:[%s936_s4 + $0x30] sm:$0xff]  ;;  %v328_v18 = vld [vmem:[%s936_s4 + $0x20] sm:$0xff]  ;;  %v271_v19 = vld [vmem:[%s749_s27 + $0x18] sm:$0xff] }
  0x19   : > { %632 = vmatpush.msra.mxu3 %v337_v7  ;;  %v327_v20 = vld [vmem:[%s936_s4 + $0x18] sm:$0xff]  ;;  %v326_v21 = vld [vmem:[%s936_s4 + $0x10] sm:$0xff]  ;;  %v325_v22 = vld [vmem:[%s936_s4 + $0x8] sm:$0xff]  ;;  %672 = vset.pattern.permute.xlu0 %v698_v39 }
  0x1a   : > { %345 = vmatpush.msrb.mxu0 %v338_v6  ;;  %633 = vmatpush.msra.mxu1 %v336_v8  ;;  %v324_v23 = vld [vmem:[%s936_s4] sm:$0xff]  ;;  %v391_v44 = vld [vmem:[%s754_s30 + $0x8] sm:$0xff]  ;;  %v392_v52 = vld [vmem:[%s754_s30 + $0x10] sm:$0xff] }
  0x1b   : > { %634 = vmatpush.msra.mxu3 %v336_v8  ;;  %v674_v24 = vld [vmem:[%s935_s3] ss:$0 sm:$0xff]  ;;  %673 = vset.pattern.permute.xlu1 %v698_v39  ;;  %v393_v56 = vld [vmem:[%s754_s30 + $0x18] sm:$0xff] }
  0x1c   : > { %346 = vmatpush.msrb.mxu0 %v337_v7  ;;  %635 = vmatpush.msra.mxu1 %v335_v10  ;;  %v390_v38 = vld [vmem:[%s754_s30] sm:$0xff] }
  0x1d   : > { %636 = vmatpush.msra.mxu3 %v335_v10  ;;  %395 = vperm.xlu2 %671, %v390_v38   ;;  %v675_v41 = vld [vmem:[%s937_s5] ss:$0 sm:$0xff] }
  0x1e   : > { %347 = vmatpush.msrb.mxu0 %v336_v8  ;;  %637 = vmatpush.msra.mxu1 %v334_v11 }
  0x1f   : > { %616 = vmatmul.msk.f32.gmra.mxu0 %vm278_vm1, %v269_v9  ;;  %638 = vmatpush.msra.mxu3 %v334_v11 }
  0x20   : > { %348 = vmatpush.msrb.mxu0 %v335_v10  ;;  %639 = vmatpush.msra.mxu1 %v333_v12 }
  0x21   : > { %640 = vmatpush.msra.mxu3 %v333_v12 }
  0x22   : > { %349 = vmatpush.msrb.mxu0 %v334_v11  ;;  %641 = vmatpush.msra.mxu1 %v332_v13 }
  0x23   : > { %642 = vmatpush.msra.mxu3 %v332_v13 }
  0x24   : > { %350 = vmatpush.msrb.mxu0 %v333_v12  ;;  %643 = vmatpush.msra.mxu1 %v331_v15 }
  0x25   : > { %644 = vmatpush.msra.mxu3 %v331_v15  ;;  %398 = vperm.xlu2 %671, %v391_v44  }
  0x26   : > { %351 = vmatpush.msrb.mxu0 %v332_v13  ;;  %645 = vmatpush.msra.mxu1 %v330_v16 }
  0x27   : > { %617 = vmatmul.msk.f32.gmra.mxu0 %vm278_vm1, %v270_v14  ;;  %646 = vmatpush.msra.mxu3 %v330_v16 }
  0x28   : > { %352 = vmatpush.msrb.mxu0 %v331_v15  ;;  %647 = vmatpush.msra.mxu1 %v329_v17 }
  0x29   : > { %648 = vmatpush.msra.mxu3 %v329_v17 }
  0x2a   : > { %353 = vmatpush.msrb.mxu0 %v330_v16  ;;  %649 = vmatpush.msra.mxu1 %v328_v18 }
  0x2b   : > { %650 = vmatpush.msra.mxu3 %v328_v18 }
  0x2c   : > { %354 = vmatpush.msrb.mxu0 %v329_v17  ;;  %651 = vmatpush.msra.mxu1 %v327_v20  ;;  %v410_v17 = vld [vmem:[#allocation2] sm:$0x1] }
  0x2d   : > { %652 = vmatpush.msra.mxu3 %v327_v20 }
  0x2e   : > { %355 = vmatpush.msrb.mxu0 %v328_v18  ;;  %653 = vmatpush.msra.mxu1 %v326_v21 }
  0x2f   : > { %618 = vmatmul.msk.f32.gmra.mxu0 %vm278_vm1, %v271_v19  ;;  %654 = vmatpush.msra.mxu3 %v326_v21 }
  0x30   : > { %356 = vmatpush.msrb.mxu0 %v327_v20  ;;  %655 = vmatpush.msra.mxu1 %v325_v22 }
  0x31   : > { %656 = vmatpush.msra.mxu3 %v325_v22 }
  0x32   : > { %357 = vmatpush.msrb.mxu0 %v326_v21  ;;  %657 = vmatpush.msra.mxu1 %v324_v23 }
  0x33   : > { %658 = vmatpush.msra.mxu3 %v324_v23 }
  0x34   : > { %358 = vmatpush.msrb.mxu0 %v325_v22 }
  0x36   : > { %359 = vmatpush.msrb.mxu0 %v324_v23 }
  0x77   : > { %v396_v58 = vpop.permute.xlu2 %395 }
  0x78   : > { %vm406_vm4 = vcmp.eq.s32.totalorder %v396_v58, %v827_v40 }
  0x7f   : > { %v399_v61 = vpop.permute.xlu2 %398 }
  0x80   : > { %vm407_vm3 = vcmp.eq.s32.totalorder %v399_v61, %v827_v40 }
  0x94   : > { %v308_v25 = vpop.f32.mrf.mxu0 }
  0x95   : > { %v309_v26 = vadd.f32 %v674_v24, %v308_v25 }
  0x97   : > { %v320_v27 = vmax.f32 %v309_v26, 0.0 }
  0x99   : > { %360 = vmatmul.f32.vlgmr.msrb.gmra.mxu0 %v320_v27 }
  0x9c   : > { %v311_v28 = vpop.f32.mrf.mxu0 }
  0x9d   : > { %v312_v29 = vadd.f32 %v674_v24, %v311_v28 }
  0x9f   : > { %v321_v30 = vmax.f32 %v312_v29, 0.0 }
  0xa1   : > { %363 = vmatmul.f32.vlgmr.msra.gmra.mxu1 %v321_v30  ;;  %v535_v30 = vshrl.u32 %v373_v37, 7 }
  0xa3   : > { %vm536_vm9 = vcmp.eq.s32.totalorder %v535_v30, %v827_v40 }
  0xa4   : > { %v314_v31 = vpop.f32.mrf.mxu0 }
  0xa5   : > { %v315_v32 = vadd.f32 %v674_v24, %v314_v31 }
  0xa7   : > { %v322_v33 = vmax.f32 %v315_v32, 0.0 }
  0xa9   : > { %366 = vmatmul.f32.vlgmr.msra.gmra.mxu3 %v322_v33 }
  0xac   : > { %v317_v34 = vpop.f32.mrf.mxu0 }
  0xad   : > { %v318_v35 = vadd.f32 %v674_v24, %v317_v34 }
  0xaf   : > { %v323_v36 = vmax.f32 %v318_v35, 0.0 }
  0xb1   : > { %369 = vmatmul.f32.gmra.mxu3 %v323_v36  ;;  %v699_v36 = vmov 0.0  }
  0xb2   : > { %v619_v38 = vsel %vm406_vm4, 1.0, %v699_v36  ;;  %v620_v39 = vsel %vm407_vm3, 1.0, %v699_v36 }
 0x116   : > { %v361_v42 = vpop.f32.mrf.mxu0 }
 0x117   : > { %v833_v43 = vadd.f32 %v675_v41, %v361_v42 }
 0x119   : > { %v378_v45 = vsel %vm375_vm2, %v833_v43, 0.0 }
 0x11a   : > { %382 = vadd.xlane.f32.xlu0 %v378_v45 }
 0x11e   : > { %v364_v46 = vpop.f32.mrf.mxu1 }
 0x11f   : > { %v839_v47 = vadd.f32 %v675_v41, %v364_v46 }
 0x121   : > { %v379_v48 = vsel %vm375_vm2, %v839_v47, 0.0 }
 0x122   : > { %384 = vadd.xlane.f32.xlu0 %v379_v48 }
 0x12c   : > { %v367_v49 = vpop.f32.mrf.mxu3 }
 0x12d   : > { %v844_v50 = vadd.f32 %v675_v41, %v367_v49 }
 0x12f   : > { %v380_v51 = vsel %vm375_vm2, %v844_v50, 0.0 }
 0x130   : > { %386 = vadd.xlane.f32.xlu1 %v380_v51 }
 0x134   : > { %v370_v53 = vpop.f32.mrf.mxu3 }
 0x135   : > { %v850_v54 = vadd.f32 %v675_v41, %v370_v53 }
 0x136   : > { %401 = vperm.xlu0 %672, %v392_v52  }
 0x137   : > { %v381_v55 = vsel %vm375_vm2, %v850_v54, 0.0 }
 0x138   : > { %388 = vadd.xlane.f32.xlu1 %v381_v55 }
 0x151   : > { %404 = vperm.xlu1 %673, %v393_v56  }
 0x18d   : > { %v856_v57 = vpop.xlane.xlu0 %382 }
 0x18e   : > { %v411_v1 = vsel %vm406_vm4, %v856_v57, -1e+30 }
 0x18f   : > { %v416_v6 = vsel %vm415_vm6, %v411_v1, -inf }
 0x195   : > { %v860_v60 = vpop.xlane.xlu0 %384 }
 0x196   : > { %v412_v0 = vsel %vm407_vm3, %v860_v60, -1e+30 }
 0x197   : > { %v417_v4 = vsel %vm415_vm6, %v412_v0, -inf }
 0x198   : > { %v420_v9 = vmax.f32 %v416_v6, %v417_v4 }
 0x1a3   : > { %v858_v59 = vpop.xlane.xlu1 %386 }
 0x1a8   : > { %v402_v63 = vpop.permute.xlu0 %401 }
 0x1a9   : > { %vm408_vm5 = vcmp.eq.s32.totalorder %v402_v63, %v827_v40 }
 0x1aa   : > { %v413_v2 = vsel %vm408_vm5, %v858_v59, -1e+30  ;;  %v621_v37 = vsel %vm408_vm5, 1.0, %v699_v36 }
 0x1ab   : > { %v862_v62 = vpop.xlane.xlu1 %388  ;;  %v418_v7 = vsel %vm415_vm6, %v413_v2, -inf }
 0x1c3   : > { %v405_v3 = vpop.permute.xlu1 %404 }
 0x1c4   : > { %vm409_vm7 = vcmp.eq.s32.totalorder %v405_v3, %v827_v40 }
 0x1c5   : > { %v414_v5 = vsel %vm409_vm7, %v862_v62, -1e+30  ;;  %v622_v41 = vsel %vm409_vm7, 1.0, %v699_v36 }
 0x1c6   : > { %v419_v8 = vsel %vm415_vm6, %v414_v5, -inf }
 0x1c7   : > { %v421_v10 = vmax.f32 %v418_v7, %v419_v8 }
 0x1c9   : > { %v422_v11 = vmax.f32 %v420_v9, %v421_v10 }
 0x1cb   : > { %v423_v12 = vrot.slane %v422_v11, 4 }
 0x1cd   : > { %v424_v13 = vmax.f32 %v422_v11, %v423_v12 }
 0x1cf   : > { %v425_v14 = vrot.slane %v424_v13, 2 }
 0x1d1   : > { %v426_v15 = vmax.f32 %v424_v13, %v425_v14 }
 0x1d3   : > { %v427_v16 = vrot.slane %v426_v15, 1 }
 0x1d5   : > { %v428_v18 = vmax.f32 %v426_v15, %v427_v16 }
 0x1d7   : > { %v429_v19 = vmax.f32 %v410_v17, %v428_v18 }
 0x1d9   : > { %v436_v20 = vperm.slane %v429_v19, 0  ;;  %434 = vst.msk [vmem:[#allocation2] sm:$0x1] %vm433_vm8, %v429_v19  ;;  %v430_v21 = vsub.f32 %v410_v17, %v429_v19 }
 0x1db   : > { %v441_v22 = vsel %vm409_vm7, %v436_v20, 0.0  ;;  %v440_v23 = vsel %vm408_vm5, %v436_v20, 0.0  ;;  %v439_v24 = vsel %vm407_vm3, %v436_v20, 0.0  ;;  %v431_v28 = vmul.f32 1.442695, %v430_v21 }
 0x1dc   : > { %v451_v25 = vsel %vm415_vm6, %v441_v22, 0.0  ;;  %v448_v26 = vsel %vm415_vm6, %v440_v23, 0.0  ;;  %v445_v27 = vsel %vm415_vm6, %v439_v24, 0.0  ;;  %v438_v29 = vsel %vm406_vm4, %v436_v20, 0.0 }
 0x1dd   : > { %452 = vadd.xlane.f32.xlu2 %v451_v25  ;;  %449 = vadd.xlane.f32.xlu1 %v448_v26  ;;  %676 = vpow2.f32 %v431_v28  ;;  %v442_v31 = vsel %vm415_vm6, %v438_v29, 0.0 }
 0x1de   : > { %446 = vadd.xlane.f32.xlu0 %v445_v27 }
 0x1e3   : > { %v677_v32 = vpop.eup %676 }
 0x1e4   : > { %v538_v33 = vperm.slane %v677_v32, 0 }
 0x1e5   : > { %443 = vadd.xlane.f32.xlu2 %v442_v31 }
 0x1e6   : > { %v540_v34 = vsel %vm536_vm9, %v538_v33, 0.0 }
 0x1e7   : > { %v541_v35 = vsel %vm415_vm6, %v540_v34, 0.0 }
 0x1e8   : > { %542 = vadd.xlane.f32.xlu1 %v541_v35 }
 0x20e   : > { %478 = vxpose.xlu2.b32.start [1/4] (short) (narrow) %v619_v38, 8 }
 0x216   : > { %479 = vxpose.xlu2.b32.cont [2/4] (short) (narrow) %v620_v39, 8 }
 0x21e   : > { %480 = vxpose.xlu2.b32.cont [3/4] (short) (narrow) %v621_v37, 8 }
 0x226   : > { %481 = vxpose.xlu2.b32.end [4/4] (short) (narrow) %v622_v41, 8 }
 0x250   : > { %v453_v42 = vpop.xlane.xlu2 %452  ;;  %v450_v44 = vpop.xlane.xlu1 %449 }
 0x251   : > { %v457_v45 = vsub.f32 %v862_v62, %v453_v42  ;;  %v456_v46 = vsub.f32 %v858_v59, %v450_v44  ;;  %v447_v48 = vpop.xlane.xlu0 %446 }
 0x252   : > { %v455_v49 = vsub.f32 %v860_v60, %v447_v48 }
 0x253   : > { %v464_v51 = vmul.f32 1.442695, %v457_v45  ;;  %v462_v52 = vmul.f32 1.442695, %v456_v46 }
 0x254   : > { %v460_v53 = vmul.f32 1.442695, %v455_v49 }
 0x255   : > { %678 = vpow2.f32 %v464_v51 }
 0x256   : > { %680 = vpow2.f32 %v462_v52 }
 0x257   : > { %682 = vpow2.f32 %v460_v53 }
 0x258   : > { %v444_v55 = vpop.xlane.xlu2 %443 }
 0x259   : > { %v454_v56 = vsub.f32 %v856_v57, %v444_v55 }
 0x25b   : > { %v679_v58 = vpop.eup %678  ;;  %v458_v61 = vmul.f32 1.442695, %v454_v56  ;;  %v543_v3 = vpop.xlane.xlu1 %542 }
 0x25c   : > { %v681_v63 = vpop.eup %680  ;;  %v469_v0 = vmul.f32 %v679_v58, %v850_v54  ;;  %v544_v54 = vld [vmem:[%s938_s6] sm:$0xff] }
 0x25d   : > { %v683_v62 = vpop.eup %682  ;;  %684 = vpow2.f32 %v458_v61  ;;  %v468_v59 = vmul.f32 %v681_v63, %v844_v50  ;;  %v545_v4 = vmul.f32 %v544_v54, %v543_v3 }
 0x25e   : > { %526 = vmatpush.msra.mxu2 %v469_v0  ;;  %v467_v60 = vmul.f32 %v683_v62, %v839_v47 }
 0x260   : > { %527 = vmatpush.msra.mxu2 %v468_v59 }
 0x262   : > { %528 = vmatpush.msra.mxu2 %v467_v60 }
 0x263   : > { %v685_v1 = vpop.eup %684 }
 0x264   : > { %v466_v2 = vmul.f32 %v685_v1, %v833_v43 }
 0x266   : > { %529 = vmatpush.msra.mxu2 %v466_v2 }
 0x2a7   : > { %v494_v57 = vpop.trf.xlu2 }
 0x2a8   : > { %623 = vmatmul.msk.f32.vlgmr.msra.gmra.mxu2 %vm510_vm10, %v494_v57 }
 0x32a   : > { %551 = sbr.rel (%p624_p5) target bundleno = 957 (0x3bd), region = 52 }
 0x32b   : > { %v531_v5 = vpop.f32.mrf.mxu2 }
 0x32c   : > { %v546_v6 = vadd.f32 %v545_v4, %v531_v5 }
 0x32e   : > { %547 = vst [vmem:[%s938_s6] sm:$0xff] %v546_v6 }
 0x32f   : > { %vm553_vm11 = vcmp.eq.s32.totalorder %v827_v40, 126 }
 0x335   : > { %v552_v43 = vld [vmem:[%s938_s6] sm:$0xff] }
 0x336   : > { %v556_v47 = vsel %vm553_vm11, %v552_v43, 0.0 }
 0x337   : > { %557 = vadd.xlane.f32.xlu0 %v556_v47 }
 0x3aa   : > { %v558_v50 = vpop.xlane.xlu0 %557 }
 0x3ab   : > { %v559_v7 = vadd.f32 1e-16, %v558_v50 }
 0x3ad   : > { %686 = vrcp.f32 %v559_v7 }
 0x3b3   : > { %v687_v8 = vpop.eup %686 }
 0x3b4   : > { %v561_v9 = vmul.f32 %v687_v8, %v559_v7 }
 0x3b6   : > { %v562_v10 = vsub.f32 2.0, %v561_v9 }
 0x3b8   : > { %v563_v11 = vmul.f32 %v687_v8, %v562_v10 }
 0x3ba   : > { %v564_v12 = vmul.f32 %v563_v11, %v552_v43 }
 0x3bc   : > { %565 = vst [vmem:[%s938_s6] sm:$0xff] %v564_v12 }
 0x3bd PF: > { %s16_s21 = sadd.s32 1, %s694_s21  }
 0x3be   : > { %p13_p6 = scmp.ge.s32.totalorder %s16_s21, 4  }
 0x3c0   :  { %15 = sbr.rel (!%p13_p6) target bundleno = 1 (0x1), region = 81 }

</bundles_post_ra>
